<compile_context>
chip_gen: v7x
topology: tpu7x:2x2x1
jax: 0.10.0
libtpu: 0.0.40
codegen_flags: <defaults>
</compile_context>

<pallas_src>
import functools

import jax
import jax.numpy as jnp
from jax.experimental import pallas as pl
from jax.experimental.pallas import tpu as pltpu


def _ls_ce_kernel(logits_ref, target_ref, out_ref, acc_ref, *,
                  eps: float, n_classes: int, n_rows: int, tb: int, half: int):
    o = pl.program_id(0)          # 2-way batch split ("parallel" -> megacore)
    i = pl.program_id(1)          # reduction steps within this split

    @pl.when(i == 0)
    def _():
        acc_ref[...] = jnp.zeros_like(acc_ref)

    x_in = logits_ref[...]        # (tb, C) in the input dtype (f32 or bf16)
    t = target_ref[...]           # (tb, 1) int32
    TB, C = x_in.shape

    # Row max and target gather are exact in the input dtype.
    col = jax.lax.broadcasted_iota(jnp.int32, (TB, C), 1)
    m = jnp.max(x_in, axis=-1, keepdims=True).astype(jnp.float32)          # (tb,1)
    g = jnp.sum(jnp.where(col == t, x_in, jnp.zeros_like(x_in)),
                axis=-1, keepdims=True).astype(jnp.float32)                # x[i, t_i]

    # exp / logsumexp path in f32.
    x = x_in.astype(jnp.float32)
    e = jnp.sum(jnp.exp(x - m), axis=-1, keepdims=True)
    lse = jnp.log(e)
    s = jnp.sum(x, axis=-1, keepdims=True)                                 # sum_j x

    mls = m + lse
    neg_sum_lp = n_classes * mls - s          # -sum_j log_softmax[i, j]
    neg_tgt_lp = mls - g                      # -log_softmax[i, t_i]
    per_row = neg_sum_lp * (eps / n_classes) + neg_tgt_lp * (1.0 - eps)

    # Global row ids of this tile; NaN-safe select masks unspecified edge rows
    # (and the fully out-of-range duplicate block when the split is uneven).
    gb = o * half + i
    row = jax.lax.broadcasted_iota(jnp.int32, (TB, 1), 0) + gb * tb
    acc_ref[...] += jnp.where(row < n_rows, per_row, 0.0)

    @pl.when(i == pl.num_programs(1) - 1)
    def _():
        total = jnp.sum(acc_ref[...], keepdims=True) * (1.0 / n_rows)      # (1,1)
        out_ref[...] = jnp.broadcast_to(total, out_ref.shape)


def label_smoothing_cross_entropy(logits, target, *, eps: float = 0.1, tb=None):
    """logits: (B, C) float32/bfloat16, target: (B,) int. reduction='mean'."""
    B, C = logits.shape
    itemsize = jnp.dtype(logits.dtype).itemsize
    row_mult = {4: 8, 2: 16, 1: 32}.get(itemsize, 8)
    c_phys = pl.cdiv(C, 128) * 128   # physical lane width (VMEM sizing only; no data pad)

    if tb is None:
        # Working-set budget per row of a tile: 2 double-buffered logits tiles,
        # 2 double-buffered (lane-padded) target tiles, ~4 f32 temporaries and
        # the (tb,1) accumulator. 24 MiB budget -> tb ~ 2.3-2.7K at C=330,
        # well under the 48 MiB vmem limit (and v7x's 64 MiB physical VMEM).
        budget = 24 * 1024 * 1024
        per_row = (2 * c_phys * itemsize   # logits double buffer
                   + 2 * 128 * 4           # target double buffer
                   + 4 * c_phys * 4        # f32 temporaries in the kernel body
                   + 128 * 4)              # accumulator row
        tb = budget // per_row
    tb = min(int(tb), 4096, pl.cdiv(B, row_mult) * row_mult)
    tb = max(row_mult, (tb // row_mult) * row_mult)

    nb = pl.cdiv(B, tb)                 # batch blocks (partial edge block allowed)
    n_split = 2 if nb >= 2 else 1       # shard the reduction across 2 TCs on v7x
    half = pl.cdiv(nb, n_split)

    t = target.astype(jnp.int32).reshape(B, 1)

    def in_map(o, i):
        # Clamp so the duplicate tail iteration of an uneven split never DMAs
        # out of bounds; its rows are masked out in the kernel.
        return (jnp.minimum(o * half + i, nb - 1), 0)

    kernel = functools.partial(_ls_ce_kernel, eps=float(eps), n_classes=C,
                               n_rows=B, tb=tb, half=half)
    out = pl.pallas_call(
        kernel,
        # One (8,128) f32 slab per split (lane/sublane aligned); each is filled
        # with that split's partial loss.
        out_shape=jax.ShapeDtypeStruct((8 * n_split, 128), jnp.float32),
        grid=(n_split, half),
        in_specs=[pl.BlockSpec((tb, C), in_map),
                  pl.BlockSpec((tb, 1), in_map)],
        out_specs=pl.BlockSpec((8, 128), lambda o, i: (o, 0)),
        scratch_shapes=[pltpu.VMEM((tb, 1), jnp.float32)],
        compiler_params=pltpu.CompilerParams(
            dimension_semantics=("parallel", "arbitrary"),
            vmem_limit_bytes=48 * 1024 * 1024),
    )(logits, t)
    return jnp.sum(out[::8, 0])


def _reference(logits, target, eps=0.1):
    # Pure-JAX reference mirroring the PyTorch forward (reduction='mean').
    log_preds = jax.nn.log_softmax(logits.astype(jnp.float32), axis=-1)
    B, C = logits.shape
    smooth = jnp.mean(-jnp.sum(log_preds, axis=-1))
    nll = jnp.mean(-log_preds[jnp.arange(B), target])
    return smooth * eps / C + (1 - eps) * nll


if __name__ == "__main__":
    key = jax.random.PRNGKey(0)
    k1, k2, k3, k4, k5, k6 = jax.random.split(key, 6)

    # Test 1: float32 logits, single batch tile (module default 330 classes).
    B1, C1 = 16, 330
    logits1 = jax.random.normal(k1, (B1, C1), dtype=jnp.float32)
    target1 = jax.random.randint(k2, (B1,), 0, C1, dtype=jnp.int32)
    loss1 = jax.block_until_ready(label_smoothing_cross_entropy(logits1, target1, eps=0.1))
    ref1 = _reference(logits1, target1, eps=0.1)
    assert jnp.allclose(loss1, ref1, atol=3e-4, rtol=3e-5), (loss1, ref1)

    # Test 2: bfloat16 logits, multi-block grid with the 2-way split and a
    # partial edge block (exercises row masking + the accumulator pipeline).
    B2, C2 = 50, 330
    logits2 = jax.random.normal(k3, (B2, C2), dtype=jnp.float32).astype(jnp.bfloat16)
    target2 = jax.random.randint(k4, (B2,), 0, C2, dtype=jnp.int32)
    loss2 = jax.block_until_ready(
        label_smoothing_cross_entropy(logits2, target2, eps=0.1, tb=16))
    ref2 = _reference(logits2.astype(jnp.float32), target2, eps=0.1)
    assert jnp.allclose(loss2, ref2, atol=3e-4, rtol=3e-5), (loss2, ref2)

    # Test 3: float32, multi-block with an uneven 2-way split and a partial
    # edge block (exercises the clamped duplicate-block path).
    B3, C3 = 30, 330
    logits3 = jax.random.normal(k5, (B3, C3), dtype=jnp.float32)
    target3 = jax.random.randint(k6, (B3,), 0, C3, dtype=jnp.int32)
    loss3 = jax.block_until_ready(
        label_smoothing_cross_entropy(logits3, target3, eps=0.1, tb=8))
    ref3 = _reference(logits3, target3, eps=0.1)
    assert jnp.allclose(loss3, ref3, atol=3e-4, rtol=3e-5), (loss3, ref3)

    print("KERNEL_OK")
</pallas_src>

<mosaic_0001>
module attributes {stable_mosaic.version = 11 : i64} {
  func.func @_ls_ce_kernel(%arg0: i32, %arg1: i32, %arg2: memref<16x330xf32, #tpu.memory_space<vmem>>, %arg3: memref<16x1xi32, #tpu.memory_space<vmem>>, %arg4: memref<8x128xf32, #tpu.memory_space<vmem>>, %arg5: memref<16x1xf32, #tpu.memory_space<vmem>>) attributes {dimension_semantics = [#tpu.dimension_semantics<parallel>, #tpu.dimension_semantics<arbitrary>], iteration_bounds = array<i64: 1, 1>, scalar_prefetch = 0 : i64, scratch_operands = 1 : i64, tpu.core_type = #tpu.core_type<tc>, window_params = [{transform_indices = @transform_0, window_bounds = array<i64: 16, 330>}, {transform_indices = @transform_1, window_bounds = array<i64: 16, 1>}, {transform_indices = @transform_2, window_bounds = array<i64: 8, 128>}]} {
    %c0_i32 = arith.constant 0 : i32
    %0 = arith.cmpi eq, %arg1, %c0_i32 : i32
    %1 = arith.extui %0 : i1 to i32
    %c0_i32_0 = arith.constant 0 : i32
    %2 = arith.cmpi ne, %1, %c0_i32_0 : i32
    scf.if %2 {
      %cst_19 = arith.constant 0.000000e+00 : f32
      %48 = vector.broadcast %cst_19 : f32 to vector<16x1xf32>
      %c0_20 = arith.constant 0 : index
      %c0_21 = arith.constant 0 : index
      %49 = vector.load %arg5[%c0_20, %c0_21] : memref<16x1xf32, #tpu.memory_space<vmem>>, vector<16x1xf32>
      tpu.vector_store %arg5[%c0_20, %c0_21], %48 {strides = array<i32>} : memref<16x1xf32, #tpu.memory_space<vmem>>, vector<16x1xf32>,
    } else {
    }
    %c0 = arith.constant 0 : index
    %c0_1 = arith.constant 0 : index
    %3 = vector.load %arg2[%c0, %c0_1] : memref<16x330xf32, #tpu.memory_space<vmem>>, vector<16x330xf32>
    %c0_2 = arith.constant 0 : index
    %c0_3 = arith.constant 0 : index
    %4 = vector.load %arg3[%c0_2, %c0_3] : memref<16x1xi32, #tpu.memory_space<vmem>>, vector<16x1xi32>
    %5 = tpu.iota {dimensions = array<i32: 1>} : vector<16x330xi32>
    %cst = arith.constant dense<0xFF800000> : vector<16xf32>
    %6 = vector.multi_reduction <maximumf>, %3, %cst [1] : vector<16x330xf32> to vector<16xf32>
    %7 = vector.shape_cast %6 : vector<16xf32> to vector<16x1xf32>
    %8 = vector.broadcast %4 : vector<16x1xi32> to vector<16x330xi32>
    %9 = arith.cmpi eq, %5, %8 : vector<16x330xi32>
    %cst_4 = arith.constant 0.000000e+00 : f32
    %10 = vector.broadcast %cst_4 : f32 to vector<16x330xf32>
    %11 = arith.select %9, %3, %10 : vector<16x330xi1>, vector<16x330xf32>
    %cst_5 = arith.constant dense<0.000000e+00> : vector<16xf32>
    %12 = vector.multi_reduction <add>, %11, %cst_5 [1] : vector<16x330xf32> to vector<16xf32>
    %13 = vector.shape_cast %12 : vector<16xf32> to vector<16x1xf32>
    %14 = vector.broadcast %7 : vector<16x1xf32> to vector<16x330xf32>
    %15 = arith.subf %3, %14 : vector<16x330xf32>
    %16 = math.exp %15 : vector<16x330xf32>
    %cst_6 = arith.constant dense<0.000000e+00> : vector<16xf32>
    %17 = vector.multi_reduction <add>, %16, %cst_6 [1] : vector<16x330xf32> to vector<16xf32>
    %18 = vector.shape_cast %17 : vector<16xf32> to vector<16x1xf32>
    %19 = math.log %18 : vector<16x1xf32>
    %cst_7 = arith.constant dense<0.000000e+00> : vector<16xf32>
    %20 = vector.multi_reduction <add>, %3, %cst_7 [1] : vector<16x330xf32> to vector<16xf32>
    %21 = vector.shape_cast %20 : vector<16xf32> to vector<16x1xf32>
    %22 = arith.addf %7, %19 : vector<16x1xf32>
    %cst_8 = arith.constant 3.300000e+02 : f32
    %23 = vector.broadcast %cst_8 : f32 to vector<16x1xf32>
    %24 = arith.mulf %23, %22 : vector<16x1xf32>
    %25 = arith.subf %24, %21 : vector<16x1xf32>
    %26 = arith.subf %22, %13 : vector<16x1xf32>
    %cst_9 = arith.constant 3.03030305E-4 : f32
    %27 = vector.broadcast %cst_9 : f32 to vector<16x1xf32>
    %28 = arith.mulf %25, %27 : vector<16x1xf32>
    %cst_10 = arith.constant 0.899999976 : f32
    %29 = vector.broadcast %cst_10 : f32 to vector<16x1xf32>
    %30 = arith.mulf %26, %29 : vector<16x1xf32>
    %31 = arith.addf %28, %30 : vector<16x1xf32>
    %c1_i32 = arith.constant 1 : i32
    %32 = arith.muli %arg0, %c1_i32 : i32
    %33 = arith.addi %32, %arg1 : i32
    %34 = tpu.iota {dimensions = array<i32: 0>} : vector<16x1xi32>
    %c16_i32 = arith.constant 16 : i32
    %35 = arith.muli %33, %c16_i32 : i32
    %36 = vector.broadcast %35 : i32 to vector<16x1xi32>
    %37 = arith.addi %34, %36 : vector<16x1xi32>
    %c0_11 = arith.constant 0 : index
    %c0_12 = arith.constant 0 : index
    %38 = vector.load %arg5[%c0_11, %c0_12] : memref<16x1xf32, #tpu.memory_space<vmem>>, vector<16x1xf32>
    %c16_i32_13 = arith.constant 16 : i32
    %39 = vector.broadcast %c16_i32_13 : i32 to vector<16x1xi32>
    %40 = arith.cmpi slt, %37, %39 : vector<16x1xi32>
    %cst_14 = arith.constant 0.000000e+00 : f32
    %41 = vector.broadcast %cst_14 : f32 to vector<16x1xf32>
    %42 = arith.select %40, %31, %41 : vector<16x1xi1>, vector<16x1xf32>
    %43 = arith.addf %38, %42 : vector<16x1xf32>
    %c0_15 = arith.constant 0 : index
    %c0_16 = arith.constant 0 : index
    %44 = vector.load %arg5[%c0_15, %c0_16] : memref<16x1xf32, #tpu.memory_space<vmem>>, vector<16x1xf32>
    tpu.vector_store %arg5[%c0_15, %c0_16], %43 {strides = array<i32>} : memref<16x1xf32, #tpu.memory_space<vmem>>, vector<16x1xf32>,
    %c0_i32_17 = arith.constant 0 : i32
    %45 = arith.cmpi eq, %arg1, %c0_i32_17 : i32
    %46 = arith.extui %45 : i1 to i32
    %c0_i32_18 = arith.constant 0 : i32
    %47 = arith.cmpi ne, %46, %c0_i32_18 : i32
    scf.if %47 {
      %c0_19 = arith.constant 0 : index
      %c0_20 = arith.constant 0 : index
      %48 = vector.load %arg5[%c0_19, %c0_20] : memref<16x1xf32, #tpu.memory_space<vmem>>, vector<16x1xf32>
      %49 = vector.shape_cast %48 : vector<16x1xf32> to vector<1x16x1xf32>
      %cst_21 = arith.constant dense<0.000000e+00> : vector<1xf32>
      %50 = vector.multi_reduction <add>, %49, %cst_21 [1, 2] : vector<1x16x1xf32> to vector<1xf32>
      %51 = vector.shape_cast %50 : vector<1xf32> to vector<1x1x1xf32>
      %52 = vector.extract %51[0, 0, 0] : f32 from vector<1x1x1xf32>
      %53 = vector.broadcast %52 : f32 to vector<1x1xf32>
      %cst_22 = arith.constant 6.250000e-02 : f32
      %54 = vector.broadcast %cst_22 : f32 to vector<1x1xf32>
      %55 = arith.mulf %53, %54 : vector<1x1xf32>
      %56 = vector.shape_cast %55 : vector<1x1xf32> to vector<1x1xf32>
      %57 = vector.broadcast %56 : vector<1x1xf32> to vector<8x128xf32>
      %c0_23 = arith.constant 0 : index
      %c0_24 = arith.constant 0 : index
      %58 = vector.load %arg4[%c0_23, %c0_24] : memref<8x128xf32, #tpu.memory_space<vmem>>, vector<8x128xf32>
      tpu.vector_store %arg4[%c0_23, %c0_24], %57 {strides = array<i32>} : memref<8x128xf32, #tpu.memory_space<vmem>>, vector<8x128xf32>,
    } else {
    }
    return
  }
  func.func @transform_0(%arg0: i32, %arg1: i32) -> (i32, i32) {
    %c1_i32 = arith.constant 1 : i32
    %0 = arith.muli %arg0, %c1_i32 : i32
    %1 = arith.addi %0, %arg1 : i32
    %c0_i32 = arith.constant 0 : i32
    %2 = arith.minsi %1, %c0_i32 : i32
    %c0_i32_0 = arith.constant 0 : i32
    %c0_i32_1 = arith.constant 0 : i32
    return %2, %c0_i32_0 : i32, i32
  }
  func.func @transform_1(%arg0: i32, %arg1: i32) -> (i32, i32) {
    %c1_i32 = arith.constant 1 : i32
    %0 = arith.muli %arg0, %c1_i32 : i32
    %1 = arith.addi %0, %arg1 : i32
    %c0_i32 = arith.constant 0 : i32
    %2 = arith.minsi %1, %c0_i32 : i32
    %c0_i32_0 = arith.constant 0 : i32
    %c0_i32_1 = arith.constant 0 : i32
    return %2, %c0_i32_0 : i32, i32
  }
  func.func @transform_2(%arg0: i32, %arg1: i32) -> (i32, i32) {
    %c0_i32 = arith.constant 0 : i32
    %c0_i32_0 = arith.constant 0 : i32
    return %arg0, %c0_i32 : i32, i32
  }
}

</mosaic_0001>

<bundles_post_ra>
// kernel: tpu_custom_call.1
= control target key start
LH: loop header
LB: loop body
LE: loop exit
PB: predicated region body
PF: predicated region fallthrough
CT: control target
= control target key end

     0   :  { %7 = vsyncpa [#allocation4], 0  ;;  %s432_s0 = inlined_call_operand.hbm [shape: f32[16,330], index: 0, kind: input, shape index: {}]   ;;  %s433_s1 = inlined_call_operand.vmem [shape: s32[16,1], index: 1, kind: input, shape index: {}]   ;;  %s434_s2 = inlined_call_operand.hbm [shape: f32[8,128], index: 2, kind: output, shape index: {}]  }
   0x1   :  { %8 = vsyncpa [#allocation5], 0  ;;  %s319_s9 = smov [#allocation3]   ;;  %s271_s13 = scalar_lea.hbm %s432_s0, 768 }
   0x2   :  { %s21_s10 = sshll.u32 %s319_s9, 4  ;;  %p272_p0 = scmp.ne.s32.totalorder %s432_s0, %s271_s13  ;;  %s22_s10 = int_to_ptr.vmem [resolvable:$true] %s21_s10 }
   0x3   :  { %p275_p1 = scmp.lt.u32.totalorder %s271_s13, %s432_s0 }
   0x5   :  { %p277_p2 = pnand %p275_p1, %p272_p0 }
   0x7   :  { %280 = shalt.err (!%p277_p2)
}
   0x8   :  { %s281_s18 = scalar_lea.vmem %s22_s10, 768  ;;  %p286_p4 = scmp.lt.s32.totalorder %s22_s10, %s22_s10 }
   0x9   :  { %p282_p3 = scmp.ne.s32.totalorder %s22_s10, %s281_s18  ;;  %p287_p5 = scmp.lt.s32.totalorder %s281_s18, %s281_s18 }
   0xb   :  { %p288_p6 = por %p287_p5, %p286_p4 }
   0xd   :  { %p289_p7 = pnand %p288_p6, %p282_p3 }
   0xf   :  { %292 = shalt.err (!%p289_p7)
}
  0x10   :  { %s320_s19 = smov 384   ;;  %s321_s20 = smov 24  }
  0x11   :  { %27 = dma.hbm_to_vmem [thread:$0]  %s432_s0, 768, %s22_s10, [#allocation4], %s320_s19, %s320_s19, %s321_s20  }
  0x12   :  { %315 = dma.done.wait [#allocation4], 768  }
  0x13   :  { %316 = vsyncadd [#allocation4], 4294966528  ;;  %v322_v0 = vmov 0   ;;  %vm88_vm0 = vcmask 605184   ;;  %v352_v1 = vld [vmem:[#allocation3] sm:$0xff]  ;;  %v354_v2 = vld [vmem:[#allocation3 + $0x10] sm:$0xff]  ;;  %v84_v15 = vlaneseq }
  0x14   :  { %253 = vset.pattern.permute.xlu1 %v322_v0  ;;  %254 = vset.pattern.permute.xlu0 %v322_v0  ;;  %v356_v3 = vld [vmem:[#allocation3 + $0x8] sm:$0xff]  ;;  %v89_v4 = vsel %vm88_vm0, %v354_v2, -inf  ;;  %v360_v5 = vld [vmem:[#allocation3 + $0x18] sm:$0xff]  ;;  %v82_v9 = vld [vmem:[%s433_s1] sm:$0xff]  ;;  %v160_v60 = vsel %vm88_vm0, %v354_v2, 0.0  ;;  %vm73_vm7 = vcmask 7168  }
  0x15   :  { %v362_v6 = vld [vmem:[#allocation3 + $0x28] sm:$0xff]  ;;  %v90_v7 = vmax.f32 %v352_v1, %v89_v4  ;;  %v370_v10 = vld [vmem:[#allocation3 + $0x20] sm:$0xff]  ;;  %100 = vperm.xlu1 %253, %v82_v9   ;;  %v83_v13 = vld [vmem:[%s433_s1 + $0x8] sm:$0xff]  ;;  %v85_v20 = vand.u32 127, %v84_v15  ;;  %v159_v59 = vadd.f32 %v356_v3, %v352_v1  ;;  %v323_v4 = vmov 0.0   ;;  %s324_s1 = smov [#allocation6]  }
  0x16   :  { %v94_v8 = vsel %vm88_vm0, %v362_v6, -inf  ;;  %v164_v62 = vadd.f32 %v370_v10, %v360_v5  ;;  %v165_v63 = vsel %vm88_vm0, %v362_v6, 0.0  ;;  %74 = vst.msk [vmem:[#allocation2] sm:$0xff] %vm73_vm7, %v323_v4  ;;  %75 = vst.msk [vmem:[#allocation2 + $0x8] sm:$0xff] %vm73_vm7, %v323_v4  ;;  %s228_s26 = sshll.u32 %s324_s1, 4  ;;  %s229_s26 = int_to_ptr.vmem [resolvable:$true] %s228_s26 }
  0x17   :  { %v95_v11 = vmax.f32 %v360_v5, %v94_v8  ;;  %v91_v12 = vmax.f32 %v90_v7, %v356_v3  ;;  %v86_v28 = vadd.s32 128, %v85_v20  ;;  %v87_v33 = vadd.s32 256, %v85_v20  ;;  %s293_s28 = scalar_lea.vmem %s229_s26, 128  ;;  %p298_p9 = scmp.lt.s32.totalorder %s229_s26, %s229_s26 }
  0x18   :  { %v161_v61 = vadd.f32 %v160_v60, %v159_v59  ;;  %v166_v0 = vadd.f32 %v165_v63, %v164_v62  ;;  %p294_p8 = scmp.ne.s32.totalorder %s229_s26, %s293_s28  ;;  %p299_p10 = scmp.lt.s32.totalorder %s293_s28, %s293_s28 }
  0x19   :  { %92 = vmax.xlane.f32.xlu0 %v91_v12  ;;  %v96_v14 = vmax.f32 %v95_v11, %v370_v10  ;;  %103 = vperm.xlu1 %253, %v83_v13  }
  0x1a   :  { %p300_p11 = por %p299_p10, %p298_p9 }
  0x1c   :  { %p301_p12 = pnand %p300_p11, %p294_p8 }
  0x1d   :  { %97 = vmax.xlane.f32.xlu0 %v96_v14 }
  0x94   :  { %v101_v29 = vpop.permute.xlu1 %100 }
  0x95   :  { %vm105_vm1 = vcmp.eq.s32.totalorder %v85_v20, %v101_v29  ;;  %vm106_vm2 = vcmp.eq.s32.totalorder %v86_v28, %v101_v29  ;;  %vm107_vm3 = vcmp.eq.s32.totalorder %v87_v33, %v101_v29  ;;  %v192_v29 = vld [vmem:[#allocation2 + $0x8] sm:$0xff] }
  0x96   :  { %v111_v35 = vsel %vm105_vm1, %v352_v1, 0.0  ;;  %v112_v36 = vsel %vm106_vm2, %v356_v3, 0.0  ;;  %v113_v38 = vsel %vm107_vm3, %v354_v2, 0.0 }
  0x97   :  { %v117_v42 = vadd.f32 %v112_v36, %v111_v35  ;;  %v118_v44 = vsel %vm88_vm0, %v113_v38, 0.0 }
  0x98   :  { %v104_v34 = vpop.permute.xlu1 %103 }
  0x99   :  { %vm108_vm4 = vcmp.eq.s32.totalorder %v85_v20, %v104_v34  ;;  %vm109_vm5 = vcmp.eq.s32.totalorder %v86_v28, %v104_v34  ;;  %vm110_vm6 = vcmp.eq.s32.totalorder %v87_v33, %v104_v34  ;;  %v119_v52 = vadd.f32 %v118_v44, %v117_v42 }
  0x9a   :  { %v114_v45 = vsel %vm108_vm4, %v360_v5, 0.0  ;;  %v115_v46 = vsel %vm109_vm5, %v370_v10, 0.0  ;;  %v116_v49 = vsel %vm110_vm6, %v362_v6, 0.0 }
  0x9b   :  { %v122_v54 = vadd.f32 %v115_v46, %v114_v45  ;;  %v123_v56 = vsel %vm88_vm0, %v116_v49, 0.0 }
  0x9d   :  { %v124_v58 = vadd.f32 %v123_v56, %v122_v54 }
  0xa6   :  { %v378_v16 = vpop.xlane.xlu0 %92 }
  0xa7   :  { %v127_v17 = vsub.f32 %v352_v1, %v378_v16  ;;  %v128_v18 = vsub.f32 %v356_v3, %v378_v16  ;;  %v129_v19 = vsub.f32 %v354_v2, %v378_v16 }
  0xa9   :  { %v133_v21 = vmul.f32 1.442695, %v127_v17  ;;  %v135_v22 = vmul.f32 1.442695, %v128_v18  ;;  %v137_v23 = vmul.f32 1.442695, %v129_v19 }
  0xaa   :  { %v386_v24 = vpop.xlane.xlu0 %97 }
  0xab   :  { %255 = vpow2.f32 %v133_v21  ;;  %v130_v25 = vsub.f32 %v360_v5, %v386_v24  ;;  %v131_v26 = vsub.f32 %v370_v10, %v386_v24  ;;  %v132_v27 = vsub.f32 %v362_v6, %v386_v24 }
  0xac   :  { %257 = vpow2.f32 %v135_v22  ;;  %v191_v22 = vld [vmem:[#allocation2] sm:$0xff] }
  0xad   :  { %259 = vpow2.f32 %v137_v23  ;;  %v139_v30 = vmul.f32 1.442695, %v130_v25  ;;  %v141_v31 = vmul.f32 1.442695, %v131_v26  ;;  %v143_v32 = vmul.f32 1.442695, %v132_v27 }
  0xaf   :  { %261 = vpow2.f32 %v139_v30 }
  0xb0   :  { %263 = vpow2.f32 %v141_v31 }
  0xb1   :  { %265 = vpow2.f32 %v143_v32 }
  0xb5   :  { %v256_v37 = vpop.eup %255 }
  0xb6   :  { %v258_v39 = vpop.eup %257 }
  0xb7   :  { %v260_v40 = vpop.eup %259  ;;  %v145_v41 = vadd.f32 %v258_v39, %v256_v37 }
  0xb8   :  { %v146_v43 = vsel %vm88_vm0, %v260_v40, 0.0 }
  0xb9   :  { %v262_v47 = vpop.eup %261  ;;  %v147_v48 = vadd.f32 %v146_v43, %v145_v41 }
  0xba   :  { %v264_v50 = vpop.eup %263 }
  0xbb   :  { %v266_v51 = vpop.eup %265  ;;  %148 = vadd.xlane.f32.xlu0 %v147_v48  ;;  %v150_v53 = vadd.f32 %v264_v50, %v262_v47 }
  0xbc   :  { %v151_v55 = vsel %vm88_vm0, %v266_v51, 0.0 }
  0xbd   :  { %v152_v57 = vadd.f32 %v151_v55, %v150_v53 }
  0xbf   :  { %120 = vadd.xlane.f32.xlu0 %v119_v52  ;;  %153 = vadd.xlane.f32.xlu1 %v152_v57 }
  0xc3   :  { %125 = vadd.xlane.f32.xlu0 %v124_v58 }
  0xc7   :  { %162 = vadd.xlane.f32.xlu0 %v161_v61 }
  0xcb   :  { %167 = vadd.xlane.f32.xlu0 %v166_v0 }
 0x148   :  { %v149_v1 = vpop.xlane.xlu0 %148 }
 0x149   :  { %267 = vlog2.f32 %v149_v1 }
 0x14c   :  { %v154_v2 = vpop.xlane.xlu1 %153  ;;  %v121_v3 = vpop.xlane.xlu0 %120 }
 0x14d   :  { %269 = vlog2.f32 %v154_v2 }
 0x150   :  { %v126_v7 = vpop.xlane.xlu0 %125 }
 0x153   :  { %v268_v8 = vpop.eup %267 }
 0x154   :  { %v156_v5 = vmul.f32 0.6931472, %v268_v8  ;;  %v163_v9 = vpop.xlane.xlu0 %162 }
 0x156   :  { %v169_v6 = vadd.f32 %v156_v5, %v378_v16 }
 0x157   :  { %v270_v10 = vpop.eup %269 }
 0x158   :  { %v158_v11 = vmul.f32 0.6931472, %v270_v10  ;;  %v175_v12 = vsub.f32 %v169_v6, %v121_v3  ;;  %v171_v13 = vmul.f32 330.0, %v169_v6  ;;  %v168_v17 = vpop.xlane.xlu0 %167 }
 0x15a   :  { %v170_v14 = vadd.f32 %v158_v11, %v386_v24  ;;  %v173_v15 = vsub.f32 %v171_v13, %v163_v9  ;;  %v179_v18 = vmul.f32 0.9, %v175_v12 }
 0x15c   :  { %v176_v19 = vsub.f32 %v170_v14, %v126_v7  ;;  %v177_v20 = vmul.f32 0.0003030303, %v173_v15  ;;  %v172_v21 = vmul.f32 330.0, %v170_v14 }
 0x15e   :  { %v181_v23 = vadd.f32 %v179_v18, %v177_v20  ;;  %v174_v25 = vsub.f32 %v172_v21, %v168_v17  ;;  %v180_v26 = vmul.f32 0.9, %v176_v19 }
 0x160   :  { %v197_v27 = vadd.f32 %v191_v22, %v181_v23  ;;  %v178_v28 = vmul.f32 0.0003030303, %v174_v25 }
 0x162   :  { %200 = vst.msk [vmem:[#allocation2] sm:$0xff] %vm73_vm7, %v197_v27  ;;  %v182_v16 = vadd.f32 %v180_v26, %v178_v28 }
 0x164   :  { %v198_v30 = vadd.f32 %v192_v29, %v182_v16 }
 0x166   :  { %201 = vst.msk [vmem:[#allocation2 + $0x8] sm:$0xff] %vm73_vm7, %v198_v30 }
 0x169   :  { %v205_v24 = vld [vmem:[#allocation2] sm:$0xff] }
 0x16a   :  { %v207_v32 = vsel %vm73_vm7, %v205_v24, 0.0 }
 0x16d   :  { %v206_v31 = vld [vmem:[#allocation2 + $0x8] sm:$0xff] }
 0x16e   :  { %v208_v33 = vsel %vm73_vm7, %v206_v31, 0.0 }
 0x16f   :  { %v209_v34 = vadd.f32 %v208_v33, %v207_v32 }
 0x171   :  { %210 = vadd.xlane.f32.xlu0 %v209_v34 }
 0x1fe   :  { %v211_v35 = vpop.xlane.xlu0 %210 }
 0x1ff   :  { %v212_v36 = vrot.slane %v211_v35, 4 }
 0x201   :  { %v213_v37 = vadd.f32 %v212_v36, %v211_v35 }
 0x203   :  { %v214_v38 = vrot.slane %v213_v37, 2 }
 0x205   :  { %v215_v39 = vadd.f32 %v214_v38, %v213_v37 }
 0x207   :  { %v216_v40 = vrot.slane %v215_v39, 1 }
 0x209   :  { %v217_v41 = vadd.f32 %v216_v40, %v215_v39 }
 0x20b   :  { %245 = vpush %v217_v41 }
 0x23c   :  { %s246_s27 = spop %245 }
 0x23d   :  { %v219_v42 = vstv %s246_s27 }
 0x23e   :  { %v220_v43 = vmul.f32 0.0625, %v219_v42 }
 0x240   :  { %221 = vst [vmem:[#allocation6] sm:$0xff] %v220_v43 }
 0x241   :  { %304 = shalt.err (!%p301_p12)
}
 0x242   :  { %s305_s3 = scalar_lea.hbm %s434_s2, 128 }
 0x243   :  { %p306_p13 = scmp.ne.s32.totalorder %s434_s2, %s305_s3  ;;  %p309_p0 = scmp.lt.u32.totalorder %s305_s3, %s434_s2 }
 0x245   :  { %p311_p1 = pnand %p309_p0, %p306_p13 }
 0x247   :  { %314 = shalt.err (!%p311_p1)
}
 0x248   :  { %231 = dma.vmem_to_hbm [thread:$0]  %s229_s26, 128, %s434_s2, [#allocation5]  }
 0x249   :  { %317 = dma.done.wait [#allocation5], 128  }
 0x24a   :  { %318 = vsyncadd [#allocation5], 4294967168 }
 0x24b   :  { %235 = vsyncpa [#allocation4], 1 }
 0x24c   :  { %236 = vsyncpa [#allocation5], 1 }

</bundles_post_ra>
